<compile_context>
chip_gen: v6e
topology: v6e:2x2x1
jax: 0.10.0
libtpu: 0.0.40
codegen_flags: <defaults>
</compile_context>

<pallas_src>
import functools

import jax
import jax.numpy as jnp
from jax.experimental import pallas as pl
from jax.experimental.pallas import tpu as pltpu


def _round_up(x, m):
    return (x + m - 1) // m * m


def _ivn_kernel(x_ref, w1_ref, w2b2_ref, z0_ref, *, k2):
    # linear1: bias1 is folded into the matmul (ones column of x_aug times the
    # bias row of w1_aug), ReLU on the VPU.
    h = jnp.dot(x_ref[...], w1_ref[...], preferred_element_type=jnp.float32)
    h = jnp.maximum(h, 0.0)
    # linear2: rows [0, k2) of w2b2 are the weight, row k2 is the bias.
    # k2 = 256 is sublane-aligned, so both static slices are cheap.
    z0 = jnp.dot(h, w2b2_ref[:k2, :], preferred_element_type=jnp.float32)
    z0_ref[...] = (z0 + w2b2_ref[k2:k2 + 1, :]).astype(z0_ref.dtype)


def pack_initial_value_params(w1, b1, w2, b2):
    """One-time packing of the MLP weights into an MXU-friendly layout.

    Hoisted out of the per-call path (review item #1): call once at init and
    reuse the result for every forward call.
    """
    f_in, hidden = w1.shape            # (7 or 5, 256)
    k2, H = w2.shape                   # (256, hidden_channels)
    assert hidden == k2, f"linear1 out ({hidden}) must match linear2 in ({k2})"

    K1 = _round_up(f_in + 1, 8)        # input features + ones column -> 8
    K2p = _round_up(k2 + 1, 8)         # w2 rows + bias row, sublane-aligned (264)
    f32 = jnp.float32

    # bias1 rides the MXU accumulate as an extra row of w1.
    w1_aug = jnp.pad(
        jnp.concatenate([w1.astype(f32), b1.reshape(1, -1).astype(f32)], axis=0),
        ((0, K1 - f_in - 1), (0, 0)))
    # w2 and b2 packed into one operand -> fewer input DMAs.
    w2b2 = jnp.pad(
        jnp.concatenate([w2.astype(f32), b2.reshape(1, -1).astype(f32)], axis=0),
        ((0, K2p - k2 - 1), (0, 0)))

    return {"w1_aug": w1_aug, "w2b2": w2b2,
            "f_in": f_in, "hidden": hidden, "k2": k2, "H": H}


def _z0_pallas(x_aug, w1_aug, w2b2, *, TB, grid, k2, single_buffer_weights):
    B_pad, K1 = x_aug.shape
    hidden = w1_aug.shape[1]
    K2p, H = w2b2.shape
    # Weights are never re-fetched (index_map (0,0)); a second pipeline buffer is
    # dead VMEM, so request single buffering when supported.
    wkw = {"pipeline_mode": pl.Buffered(1)} if single_buffer_weights else {}

    flops = 2 * B_pad * K1 * hidden + 2 * B_pad * k2 * H
    bytes_accessed = 4 * (x_aug.size + w1_aug.size + w2b2.size + B_pad * H)

    return pl.pallas_call(
        functools.partial(_ivn_kernel, k2=k2),
        out_shape=jax.ShapeDtypeStruct((B_pad, H), jnp.float32),
        grid=grid,
        in_specs=[
            pl.BlockSpec((TB, K1), lambda i: (i, 0)),             # batch tile
            pl.BlockSpec((K1, hidden), lambda i: (0, 0), **wkw),  # resident weights
            pl.BlockSpec((K2p, H), lambda i: (0, 0), **wkw),
        ],
        # Natural-width (H) output: full-extent last-dim block, no lane padding.
        out_specs=pl.BlockSpec((TB, H), lambda i: (i, 0)),
        compiler_params=pltpu.CompilerParams(
            dimension_semantics=("parallel",)),
        cost_estimate=pl.CostEstimate(
            flops=flops, transcendentals=0, bytes_accessed=bytes_accessed),
    )(x_aug, w1_aug, w2b2)


def initial_value_network_z0(static, packed, *, block_b=1024):
    """z0 = linear2(relu(linear1(static))) as one fused Pallas kernel."""
    w1_aug, w2b2 = packed["w1_aug"], packed["w2b2"]
    f_in, k2 = packed["f_in"], packed["k2"]
    K1 = w1_aug.shape[0]
    B = static.shape[0]
    assert static.shape[1] == f_in, (static.shape, f_in)

    # Tile sizing: minimise tail padding, and use >= 2 tiles whenever the batch
    # allows so ("parallel",) can run on both v7x TensorCores. Per-tile VMEM at
    # TB=1024 is ~1.3 MB, well under every generation's scoped-VMEM default.
    B8 = _round_up(B, 8)
    n_tiles = pl.cdiv(B8, block_b)
    if B8 >= 16:
        n_tiles = max(n_tiles, 2)
    TB = _round_up(pl.cdiv(B8, n_tiles), 8)
    B_pad = _round_up(B8, TB)
    grid = (B_pad // TB,)

    # x_aug: one concatenate + one pad (ones column folds bias1 into the matmul).
    f32 = jnp.float32
    ones = jnp.ones((B, 1), f32)
    x_aug = jnp.pad(jnp.concatenate([static.astype(f32), ones], axis=1),
                    ((0, B_pad - B), (0, K1 - f_in - 1)))

    try:
        z0_pad = _z0_pallas(x_aug, w1_aug, w2b2, TB=TB, grid=grid, k2=k2,
                            single_buffer_weights=True)
    except Exception:
        # pipeline_mode=pl.Buffered(1) unsupported on this jax/libtpu build:
        # fall back to default double-buffered weight blocks (identical math).
        z0_pad = _z0_pallas(x_aug, w1_aug, w2b2, TB=TB, grid=grid, k2=k2,
                            single_buffer_weights=False)

    # Padded batch rows come out equal to b2 (bias added after an all-zero matmul);
    # strip them here. A fused consumer reading the padded layout must mask them.
    return z0_pad if B_pad == B else z0_pad[:B]


def initial_value_network_forward(seq, times, coeffs, static, final_index, packed):
    """Mirror of InitialValueNetwork.forward.

    seq, times, coeffs, final_index are only consumed by the downstream
    `self.model` (Neural-CDE solver, not implemented here); z0 is returned.
    """
    z0 = initial_value_network_z0(static, packed)
    # TODO(synk): return model(seq, times, coeffs, final_index, z0=z0)
    return z0


def _init_params(key, intensity=True, hidden_channels=32):
    f_in = 7 if intensity else 5
    k1, k2, k3, k4 = jax.random.split(key, 4)
    # Matches PyTorch Linear's U(-1/sqrt(fan_in), 1/sqrt(fan_in)) init.
    lim1 = 1.0 / jnp.sqrt(f_in)
    lim2 = 1.0 / jnp.sqrt(256.0)
    w1 = jax.random.uniform(k1, (f_in, 256), jnp.float32, -lim1, lim1)
    b1 = jax.random.uniform(k2, (1, 256), jnp.float32, -lim1, lim1)
    w2 = jax.random.uniform(k3, (256, hidden_channels), jnp.float32, -lim2, lim2)
    b2 = jax.random.uniform(k4, (1, hidden_channels), jnp.float32, -lim2, lim2)
    return w1, b1, w2, b2


if __name__ == "__main__":
    key = jax.random.PRNGKey(0)
    kp, ks, kseq, kc, ks2 = jax.random.split(key, 5)

    intensity = True
    hidden_channels = 32
    batch = 2
    seq_len = 8
    n_channels = 7 if intensity else 5

    w1, b1, w2, b2 = _init_params(kp, intensity=intensity,
                                  hidden_channels=hidden_channels)
    packed = pack_initial_value_params(w1, b1, w2, b2)   # hoisted: packed once

    static = jax.random.normal(ks, (batch, n_channels), jnp.float32)
    seq = jax.random.normal(kseq, (batch, seq_len, n_channels), jnp.float32)
    times = jnp.linspace(0.0, 1.0, seq_len, dtype=jnp.float32)
    coeffs = jax.random.normal(kc, (batch, seq_len - 1, 4 * n_channels), jnp.float32)
    final_index = jnp.full((batch,), seq_len - 1, jnp.int32)

    z0 = initial_value_network_forward(seq, times, coeffs, static, final_index,
                                       packed)
    z0 = jax.block_until_ready(z0)

    # Reference check in plain JAX (same math).
    ref = jnp.maximum(static @ w1 + b1, 0.0) @ w2 + b2
    assert z0.shape == (batch, hidden_channels)
    assert jnp.allclose(z0, ref, atol=1e-5, rtol=1e-5)

    # Secondary check: larger batch exercises the multi-tile grid path
    # (grid >= 2, both v7x TensorCores active) and the tail-padding logic.
    static_big = jax.random.normal(ks2, (300, n_channels), jnp.float32)
    z0_big = jax.block_until_ready(initial_value_network_z0(static_big, packed))
    ref_big = jnp.maximum(static_big @ w1 + b1, 0.0) @ w2 + b2
    assert z0_big.shape == (300, hidden_channels)
    assert jnp.allclose(z0_big, ref_big, atol=1e-4, rtol=1e-4)

    print("KERNEL_OK")
</pallas_src>

<mosaic_0001>
module attributes {stable_mosaic.version = 11 : i64} {
  func.func @_ivn_kernel(%arg0: i32, %arg1: memref<8x8xf32, #tpu.memory_space<vmem>>, %arg2: memref<8x256xf32, #tpu.memory_space<vmem>>, %arg3: memref<264x32xf32, #tpu.memory_space<vmem>>, %arg4: memref<8x32xf32, #tpu.memory_space<vmem>>) attributes {dimension_semantics = [#tpu.dimension_semantics<parallel>], iteration_bounds = array<i64: 1>, scalar_prefetch = 0 : i64, scratch_operands = 0 : i64, tpu.core_type = #tpu.core_type<tc>, window_params = [{transform_indices = @transform_0, window_bounds = array<i64: 8, 8>}, {pipeline_mode = #tpu.pipeline_mode<synchronous>, transform_indices = @transform_1, window_bounds = array<i64: 8, 256>}, {pipeline_mode = #tpu.pipeline_mode<synchronous>, transform_indices = @transform_2, window_bounds = array<i64: 264, 32>}, {transform_indices = @transform_3, window_bounds = array<i64: 8, 32>}]} {
    %c0 = arith.constant 0 : index
    %c0_0 = arith.constant 0 : index
    %0 = vector.load %arg1[%c0, %c0_0] : memref<8x8xf32, #tpu.memory_space<vmem>>, vector<8x8xf32>
    %c0_1 = arith.constant 0 : index
    %c0_2 = arith.constant 0 : index
    %1 = vector.load %arg2[%c0_1, %c0_2] : memref<8x256xf32, #tpu.memory_space<vmem>>, vector<8x256xf32>
    %cst = arith.constant dense<0.000000e+00> : vector<8x256xf32>
    %2 = tpu.matmul %0, %1, %cst {dimension_numbers = #tpu.dot_dimension_numbers<[1], [0], [0], [1], [0, 0, 1, 1], [], []>} : vector<8x8xf32>, vector<8x256xf32>, vector<8x256xf32> -> vector<8x256xf32>
    %cst_3 = arith.constant 0.000000e+00 : f32
    %3 = vector.broadcast %cst_3 : f32 to vector<8x256xf32>
    %4 = arith.maximumf %2, %3 : vector<8x256xf32>
    %c0_4 = arith.constant 0 : index
    %c0_5 = arith.constant 0 : index
    %5 = vector.load %arg3[%c0_4, %c0_5] : memref<264x32xf32, #tpu.memory_space<vmem>>, vector<256x32xf32>
    %cst_6 = arith.constant dense<0.000000e+00> : vector<8x32xf32>
    %6 = tpu.matmul %4, %5, %cst_6 {dimension_numbers = #tpu.dot_dimension_numbers<[1], [0], [0], [1], [0, 0, 1, 1], [], []>} : vector<8x256xf32>, vector<256x32xf32>, vector<8x32xf32> -> vector<8x32xf32>
    %c256 = arith.constant 256 : index
    %c0_7 = arith.constant 0 : index
    %7 = vector.load %arg3[%c256, %c0_7] : memref<264x32xf32, #tpu.memory_space<vmem>>, vector<1x32xf32>
    %8 = vector.broadcast %7 : vector<1x32xf32> to vector<8x32xf32>
    %9 = arith.addf %6, %8 : vector<8x32xf32>
    %c0_8 = arith.constant 0 : index
    %c0_9 = arith.constant 0 : index
    %10 = vector.load %arg4[%c0_8, %c0_9] : memref<8x32xf32, #tpu.memory_space<vmem>>, vector<8x32xf32>
    tpu.vector_store %arg4[%c0_8, %c0_9], %9 {strides = array<i32>} : memref<8x32xf32, #tpu.memory_space<vmem>>, vector<8x32xf32>,
    return
  }
  func.func @transform_0(%arg0: i32) -> (i32, i32) {
    %c0_i32 = arith.constant 0 : i32
    %c0_i32_0 = arith.constant 0 : i32
    return %arg0, %c0_i32 : i32, i32
  }
  func.func @transform_1(%arg0: i32) -> (i32, i32) {
    %c0_i32 = arith.constant 0 : i32
    %c0_i32_0 = arith.constant 0 : i32
    %c0_i32_1 = arith.constant 0 : i32
    return %c0_i32, %c0_i32_0 : i32, i32
  }
  func.func @transform_2(%arg0: i32) -> (i32, i32) {
    %c0_i32 = arith.constant 0 : i32
    %c0_i32_0 = arith.constant 0 : i32
    %c0_i32_1 = arith.constant 0 : i32
    return %c0_i32, %c0_i32_0 : i32, i32
  }
  func.func @transform_3(%arg0: i32) -> (i32, i32) {
    %c0_i32 = arith.constant 0 : i32
    %c0_i32_0 = arith.constant 0 : i32
    return %arg0, %c0_i32 : i32, i32
  }
}

module attributes {stable_mosaic.version = 11 : i64} {
  func.func @_ivn_kernel(%arg0: i32, %arg1: memref<8x8xf32, #tpu.memory_space<vmem>>, %arg2: memref<8x256xf32, #tpu.memory_space<vmem>>, %arg3: memref<264x32xf32, #tpu.memory_space<vmem>>, %arg4: memref<8x32xf32, #tpu.memory_space<vmem>>) attributes {dimension_semantics = [#tpu.dimension_semantics<parallel>], iteration_bounds = array<i64: 1>, scalar_prefetch = 0 : i64, scratch_operands = 0 : i64, tpu.core_type = #tpu.core_type<tc>, window_params = [{transform_indices = @transform_0, window_bounds = array<i64: 8, 8>}, {pipeline_mode = #tpu.pipeline_mode<synchronous>, transform_indices = @transform_1, window_bounds = array<i64: 8, 256>}, {pipeline_mode = #tpu.pipeline_mode<synchronous>, transform_indices = @transform_2, window_bounds = array<i64: 264, 32>}, {transform_indices = @transform_3, window_bounds = array<i64: 8, 32>}]} {
    %c0 = arith.constant 0 : index
    %c0_0 = arith.constant 0 : index
    %0 = vector.load %arg1[%c0, %c0_0] : memref<8x8xf32, #tpu.memory_space<vmem>>, vector<8x8xf32>
    %c0_1 = arith.constant 0 : index
    %c0_2 = arith.constant 0 : index
    %1 = vector.load %arg2[%c0_1, %c0_2] : memref<8x256xf32, #tpu.memory_space<vmem>>, vector<8x256xf32>
    %cst = arith.constant dense<0.000000e+00> : vector<8x256xf32>
    %2 = tpu.matmul %0, %1, %cst {dimension_numbers = #tpu.dot_dimension_numbers<[1], [0], [0], [1], [0, 0, 1, 1], [], []>} : vector<8x8xf32>, vector<8x256xf32>, vector<8x256xf32> -> vector<8x256xf32>
    %cst_3 = arith.constant 0.000000e+00 : f32
    %3 = vector.broadcast %cst_3 : f32 to vector<8x256xf32>
    %4 = arith.maximumf %2, %3 : vector<8x256xf32>
    %c0_4 = arith.constant 0 : index
    %c0_5 = arith.constant 0 : index
    %5 = vector.load %arg3[%c0_4, %c0_5] : memref<264x32xf32, #tpu.memory_space<vmem>>, vector<256x32xf32>
    %cst_6 = arith.constant dense<0.000000e+00> : vector<8x32xf32>
    %6 = tpu.matmul %4, %5, %cst_6 {dimension_numbers = #tpu.dot_dimension_numbers<[1], [0], [0], [1], [0, 0, 1, 1], [], []>} : vector<8x256xf32>, vector<256x32xf32>, vector<8x32xf32> -> vector<8x32xf32>
    %c256 = arith.constant 256 : index
    %c0_7 = arith.constant 0 : index
    %7 = vector.load %arg3[%c256, %c0_7] : memref<264x32xf32, #tpu.memory_space<vmem>>, vector<1x32xf32>
    %8 = vector.broadcast %7 : vector<1x32xf32> to vector<8x32xf32>
    %9 = arith.addf %6, %8 : vector<8x32xf32>
    %c0_8 = arith.constant 0 : index
    %c0_9 = arith.constant 0 : index
    %10 = vector.load %arg4[%c0_8, %c0_9] : memref<8x32xf32, #tpu.memory_space<vmem>>, vector<8x32xf32>
    tpu.vector_store %arg4[%c0_8, %c0_9], %9 {strides = array<i32>} : memref<8x32xf32, #tpu.memory_space<vmem>>, vector<8x32xf32>,
    return
  }
  func.func @transform_0(%arg0: i32) -> (i32, i32) {
    %c0_i32 = arith.constant 0 : i32
    %c0_i32_0 = arith.constant 0 : i32
    return %arg0, %c0_i32 : i32, i32
  }
  func.func @transform_1(%arg0: i32) -> (i32, i32) {
    %c0_i32 = arith.constant 0 : i32
    %c0_i32_0 = arith.constant 0 : i32
    %c0_i32_1 = arith.constant 0 : i32
    return %c0_i32, %c0_i32_0 : i32, i32
  }
  func.func @transform_2(%arg0: i32) -> (i32, i32) {
    %c0_i32 = arith.constant 0 : i32
    %c0_i32_0 = arith.constant 0 : i32
    %c0_i32_1 = arith.constant 0 : i32
    return %c0_i32, %c0_i32_0 : i32, i32
  }
  func.func @transform_3(%arg0: i32) -> (i32, i32) {
    %c0_i32 = arith.constant 0 : i32
    %c0_i32_0 = arith.constant 0 : i32
    return %arg0, %c0_i32 : i32, i32
  }
}

</mosaic_0001>

<bundles_post_ra>
// kernel: tpu_custom_call.1
= control target key start
LH: loop header
LB: loop body
LE: loop exit
PB: predicated region body
PF: predicated region fallthrough
CT: control target
= control target key end

     0   :  { %vm18_vm0 = vcmask 64512   ;;  %v279_v3 = vmov 0.0   ;;  %s412_s0 = inlined_call_operand.vmem [shape: f32[8,8], index: 0, kind: input, shape index: {}]   ;;  %s413_s1 = inlined_call_operand.vmem [shape: f32[8,256], index: 1, kind: input, shape index: {}]   ;;  %s414_s2 = inlined_call_operand.vmem [shape: f32[264,32], index: 2, kind: input, shape index: {}]   ;;  %s415_s3 = inlined_call_operand.hbm [shape: f32[8,32], index: 3, kind: output, shape index: {}]  }
   0x1   :  { %v17_v0 = vld [vmem:[%s413_s1 + $0x8] sm:$0xff]  ;;  %v16_v1 = vld [vmem:[%s413_s1] sm:$0xff]  ;;  %86 = vmatprep.mubr.f32.mxu0 %v279_v3  ;;  %v126_v4 = vld [vmem:[%s414_s2 + $0xf8] sm:$0xff] }
   0x2   :  { %v15_v2 = vld [vmem:[%s412_s0] sm:$0xff]  ;;  %52 = vmatprep.subr.mxu0 %v17_v0  ;;  %v110_v5 = vld [vmem:[%s414_s2 + $0x78] sm:$0xff]  ;;  %v125_v6 = vld [vmem:[%s414_s2 + $0xf0] sm:$0xff]  ;;  %220 = vmatprep.subr.mxu1 %v126_v4 }
   0x3   :  { %53 = vmatpush1.msra.mxu0 %v16_v1  ;;  %v109_v7 = vld [vmem:[%s414_s2 + $0x70] sm:$0xff]  ;;  %221 = vmatpush3.msra.mxu1 %v110_v5  ;;  %v124_v8 = vld [vmem:[%s414_s2 + $0xe8] sm:$0xff]  ;;  %v123_v10 = vld [vmem:[%s414_s2 + $0xe0] sm:$0xff] }
   0x4   :  { %218 = vmatmul.mubr.msk.f32.vlgmr.msra.gmra.mxu0 %vm18_vm0, %v15_v2  ;;  %222 = vmatprep.subr.mxu1 %v125_v6  ;;  %v108_v9 = vld [vmem:[%s414_s2 + $0x68] sm:$0xff]  ;;  %v107_v11 = vld [vmem:[%s414_s2 + $0x60] sm:$0xff]  ;;  %v122_v12 = vld [vmem:[%s414_s2 + $0xd8] sm:$0xff] }
   0x5   :  { %223 = vmatpush3.msra.mxu1 %v109_v7  ;;  %v106_v13 = vld [vmem:[%s414_s2 + $0x58] sm:$0xff]  ;;  %v121_v14 = vld [vmem:[%s414_s2 + $0xd0] sm:$0xff] }
   0x6   :  { %224 = vmatprep.subr.mxu1 %v124_v8 }
   0x7   :  { %225 = vmatpush3.msra.mxu1 %v108_v9 }
   0x8   :  { %226 = vmatprep.subr.mxu1 %v123_v10 }
   0x9   :  { %227 = vmatpush3.msra.mxu1 %v107_v11 }
   0xa   :  { %8 = vsyncpa [#allocation3], 0  ;;  %228 = vmatprep.subr.mxu1 %v122_v12  ;;  %v105_v15 = vld [vmem:[%s414_s2 + $0x50] sm:$0xff]  ;;  %v120_v16 = vld [vmem:[%s414_s2 + $0xc8] sm:$0xff]  ;;  %s280_s24 = smov [#allocation2]   ;;  %vm202_vm1 = vcmask 261120  }
   0xb   :  { %229 = vmatpush3.msra.mxu1 %v106_v13  ;;  %v104_v17 = vld [vmem:[%s414_s2 + $0x48] sm:$0xff]  ;;  %v119_v18 = vld [vmem:[%s414_s2 + $0xc0] sm:$0xff]  ;;  %v118_v20 = vld [vmem:[%s414_s2 + $0xb8] sm:$0xff]  ;;  %s210_s25 = sshll.u32 %s280_s24, 4  ;;  %s211_s25 = int_to_ptr.vmem [resolvable:$true] %s210_s25 }
   0xc   :  { %230 = vmatprep.subr.mxu1 %v121_v14  ;;  %v103_v19 = vld [vmem:[%s414_s2 + $0x40] sm:$0xff]  ;;  %v102_v21 = vld [vmem:[%s414_s2 + $0x38] sm:$0xff]  ;;  %v117_v22 = vld [vmem:[%s414_s2 + $0xb0] sm:$0xff]  ;;  %s257_s26 = scalar_lea.vmem %s211_s25, 128  ;;  %p262_p1 = scmp.lt.s32.totalorder %s211_s25, %s211_s25 }
   0xd   :  { %231 = vmatpush3.msra.mxu1 %v105_v15  ;;  %v101_v23 = vld [vmem:[%s414_s2 + $0x30] sm:$0xff]  ;;  %v116_v24 = vld [vmem:[%s414_s2 + $0xa8] sm:$0xff]  ;;  %v115_v26 = vld [vmem:[%s414_s2 + $0xa0] sm:$0xff]  ;;  %p258_p0 = scmp.ne.s32.totalorder %s211_s25, %s257_s26  ;;  %p263_p2 = scmp.lt.s32.totalorder %s257_s26, %s257_s26 }
   0xe   :  { %232 = vmatprep.subr.mxu1 %v120_v16  ;;  %v100_v25 = vld [vmem:[%s414_s2 + $0x28] sm:$0xff]  ;;  %v99_v27 = vld [vmem:[%s414_s2 + $0x20] sm:$0xff]  ;;  %v114_v28 = vld [vmem:[%s414_s2 + $0x98] sm:$0xff] }
   0xf   :  { %233 = vmatpush3.msra.mxu1 %v104_v17  ;;  %v98_v29 = vld [vmem:[%s414_s2 + $0x18] sm:$0xff]  ;;  %v113_v30 = vld [vmem:[%s414_s2 + $0x90] sm:$0xff]  ;;  %v112_v32 = vld [vmem:[%s414_s2 + $0x88] sm:$0xff]  ;;  %p264_p3 = por %p263_p2, %p262_p1 }
  0x10   :  { %234 = vmatprep.subr.mxu1 %v119_v18  ;;  %v97_v31 = vld [vmem:[%s414_s2 + $0x10] sm:$0xff]  ;;  %v96_v33 = vld [vmem:[%s414_s2 + $0x8] sm:$0xff]  ;;  %v111_v34 = vld [vmem:[%s414_s2 + $0x80] sm:$0xff] }
  0x11   :  { %235 = vmatpush3.msra.mxu1 %v103_v19  ;;  %v95_v35 = vld [vmem:[%s414_s2] sm:$0xff]  ;;  %p265_p4 = pnand %p264_p3, %p258_p0 }
  0x12   :  { %236 = vmatprep.subr.mxu1 %v118_v20  ;;  %v219_v41 = vld [vmem:[%s414_s2 + $0x100] ss:$0 sm:$0xff] }
  0x13   :  { %237 = vmatpush3.msra.mxu1 %v102_v21 }
  0x14   :  { %238 = vmatprep.subr.mxu1 %v117_v22 }
  0x15   :  { %239 = vmatpush3.msra.mxu1 %v101_v23 }
  0x16   :  { %240 = vmatprep.subr.mxu1 %v116_v24 }
  0x17   :  { %241 = vmatpush3.msra.mxu1 %v100_v25 }
  0x18   :  { %242 = vmatprep.subr.mxu1 %v115_v26 }
  0x19   :  { %243 = vmatpush3.msra.mxu1 %v99_v27 }
  0x1a   :  { %244 = vmatprep.subr.mxu1 %v114_v28 }
  0x1b   :  { %245 = vmatpush3.msra.mxu1 %v98_v29 }
  0x1c   :  { %246 = vmatprep.subr.mxu1 %v113_v30 }
  0x1d   :  { %247 = vmatpush3.msra.mxu1 %v97_v31 }
  0x1e   :  { %248 = vmatprep.subr.mxu1 %v112_v32 }
  0x1f   :  { %249 = vmatpush3.msra.mxu1 %v96_v33 }
  0x20   :  { %250 = vmatprep.subr.mxu1 %v111_v34 }
  0x21   :  { %251 = vmatpush3.msra.mxu1 %v95_v35 }
  0xc4   :  { %v88_v36 = vpop.f32.mrf.mxu0 }
  0xc5   :  { %v93_v39 = vmax.f32 %v88_v36, 0.0 }
  0xc6   :  { %v90_v37 = vpop.f32.mrf.mxu0 }
  0xc7   :  { %v94_v38 = vmax.f32 %v90_v37, 0.0 }
  0xc9   :  { %196 = vmatprep.mubr.f32.mxu1 %v94_v38 }
  0xca   :  { %197 = vmatmul.mubr.f32.vlgmr.msra.gmra.mxu1 %v93_v39 }
 0x18a   :  { %v252_v40 = vpop.f32.mrf.mxu1 }
 0x18c   :  { %v253_v42 = vpop.f32.mrf.mxu1 }
 0x18d   :  { %v254_v43 = vadd.f32 %v253_v42, %v252_v40 }
 0x18f   :  { %v199_v44 = vadd.f32 %v254_v43, %v219_v41 }
 0x191   :  { %203 = vst.msk [vmem:[#allocation2] sm:$0xff] %vm202_vm1, %v199_v44 }
 0x192   :  { %268 = shalt.err (!%p265_p4)
}
 0x193   :  { %213 = dma.vmem_to_hbm [thread:$0]  %s211_s25, 128, %s415_s3, [#allocation3]  }
 0x194   :  { %277 = dma.done.wait [#allocation3], 128  }
 0x195   :  { %278 = vsyncadd [#allocation3], 4294967168 }
 0x196   :  { %217 = vsyncpa [#allocation3], 1 }

// kernel: tpu_custom_call.1
= control target key start
LH: loop header
LB: loop body
LE: loop exit
PB: predicated region body
PF: predicated region fallthrough
CT: control target
= control target key end

     0   :  { %vm18_vm0 = vcmask 64512   ;;  %v279_v3 = vmov 0.0   ;;  %s412_s0 = inlined_call_operand.vmem [shape: f32[8,8], index: 0, kind: input, shape index: {}]   ;;  %s413_s1 = inlined_call_operand.vmem [shape: f32[8,256], index: 1, kind: input, shape index: {}]   ;;  %s414_s2 = inlined_call_operand.vmem [shape: f32[264,32], index: 2, kind: input, shape index: {}]   ;;  %s415_s3 = inlined_call_operand.hbm [shape: f32[8,32], index: 3, kind: output, shape index: {}]  }
   0x1   :  { %v17_v0 = vld [vmem:[%s413_s1 + $0x8] sm:$0xff]  ;;  %v16_v1 = vld [vmem:[%s413_s1] sm:$0xff]  ;;  %86 = vmatprep.mubr.f32.mxu0 %v279_v3  ;;  %v126_v4 = vld [vmem:[%s414_s2 + $0xf8] sm:$0xff] }
   0x2   :  { %v15_v2 = vld [vmem:[%s412_s0] sm:$0xff]  ;;  %52 = vmatprep.subr.mxu0 %v17_v0  ;;  %v110_v5 = vld [vmem:[%s414_s2 + $0x78] sm:$0xff]  ;;  %v125_v6 = vld [vmem:[%s414_s2 + $0xf0] sm:$0xff]  ;;  %220 = vmatprep.subr.mxu1 %v126_v4 }
   0x3   :  { %53 = vmatpush1.msra.mxu0 %v16_v1  ;;  %v109_v7 = vld [vmem:[%s414_s2 + $0x70] sm:$0xff]  ;;  %221 = vmatpush3.msra.mxu1 %v110_v5  ;;  %v124_v8 = vld [vmem:[%s414_s2 + $0xe8] sm:$0xff]  ;;  %v123_v10 = vld [vmem:[%s414_s2 + $0xe0] sm:$0xff] }
   0x4   :  { %218 = vmatmul.mubr.msk.f32.vlgmr.msra.gmra.mxu0 %vm18_vm0, %v15_v2  ;;  %222 = vmatprep.subr.mxu1 %v125_v6  ;;  %v108_v9 = vld [vmem:[%s414_s2 + $0x68] sm:$0xff]  ;;  %v107_v11 = vld [vmem:[%s414_s2 + $0x60] sm:$0xff]  ;;  %v122_v12 = vld [vmem:[%s414_s2 + $0xd8] sm:$0xff] }
   0x5   :  { %223 = vmatpush3.msra.mxu1 %v109_v7  ;;  %v106_v13 = vld [vmem:[%s414_s2 + $0x58] sm:$0xff]  ;;  %v121_v14 = vld [vmem:[%s414_s2 + $0xd0] sm:$0xff] }
   0x6   :  { %224 = vmatprep.subr.mxu1 %v124_v8 }
   0x7   :  { %225 = vmatpush3.msra.mxu1 %v108_v9 }
   0x8   :  { %226 = vmatprep.subr.mxu1 %v123_v10 }
   0x9   :  { %227 = vmatpush3.msra.mxu1 %v107_v11 }
   0xa   :  { %8 = vsyncpa [#allocation3], 0  ;;  %228 = vmatprep.subr.mxu1 %v122_v12  ;;  %v105_v15 = vld [vmem:[%s414_s2 + $0x50] sm:$0xff]  ;;  %v120_v16 = vld [vmem:[%s414_s2 + $0xc8] sm:$0xff]  ;;  %s280_s24 = smov [#allocation2]   ;;  %vm202_vm1 = vcmask 261120  }
   0xb   :  { %229 = vmatpush3.msra.mxu1 %v106_v13  ;;  %v104_v17 = vld [vmem:[%s414_s2 + $0x48] sm:$0xff]  ;;  %v119_v18 = vld [vmem:[%s414_s2 + $0xc0] sm:$0xff]  ;;  %v118_v20 = vld [vmem:[%s414_s2 + $0xb8] sm:$0xff]  ;;  %s210_s25 = sshll.u32 %s280_s24, 4  ;;  %s211_s25 = int_to_ptr.vmem [resolvable:$true] %s210_s25 }
   0xc   :  { %230 = vmatprep.subr.mxu1 %v121_v14  ;;  %v103_v19 = vld [vmem:[%s414_s2 + $0x40] sm:$0xff]  ;;  %v102_v21 = vld [vmem:[%s414_s2 + $0x38] sm:$0xff]  ;;  %v117_v22 = vld [vmem:[%s414_s2 + $0xb0] sm:$0xff]  ;;  %s257_s26 = scalar_lea.vmem %s211_s25, 128  ;;  %p262_p1 = scmp.lt.s32.totalorder %s211_s25, %s211_s25 }
   0xd   :  { %231 = vmatpush3.msra.mxu1 %v105_v15  ;;  %v101_v23 = vld [vmem:[%s414_s2 + $0x30] sm:$0xff]  ;;  %v116_v24 = vld [vmem:[%s414_s2 + $0xa8] sm:$0xff]  ;;  %v115_v26 = vld [vmem:[%s414_s2 + $0xa0] sm:$0xff]  ;;  %p258_p0 = scmp.ne.s32.totalorder %s211_s25, %s257_s26  ;;  %p263_p2 = scmp.lt.s32.totalorder %s257_s26, %s257_s26 }
   0xe   :  { %232 = vmatprep.subr.mxu1 %v120_v16  ;;  %v100_v25 = vld [vmem:[%s414_s2 + $0x28] sm:$0xff]  ;;  %v99_v27 = vld [vmem:[%s414_s2 + $0x20] sm:$0xff]  ;;  %v114_v28 = vld [vmem:[%s414_s2 + $0x98] sm:$0xff] }
   0xf   :  { %233 = vmatpush3.msra.mxu1 %v104_v17  ;;  %v98_v29 = vld [vmem:[%s414_s2 + $0x18] sm:$0xff]  ;;  %v113_v30 = vld [vmem:[%s414_s2 + $0x90] sm:$0xff]  ;;  %v112_v32 = vld [vmem:[%s414_s2 + $0x88] sm:$0xff]  ;;  %p264_p3 = por %p263_p2, %p262_p1 }
  0x10   :  { %234 = vmatprep.subr.mxu1 %v119_v18  ;;  %v97_v31 = vld [vmem:[%s414_s2 + $0x10] sm:$0xff]  ;;  %v96_v33 = vld [vmem:[%s414_s2 + $0x8] sm:$0xff]  ;;  %v111_v34 = vld [vmem:[%s414_s2 + $0x80] sm:$0xff] }
  0x11   :  { %235 = vmatpush3.msra.mxu1 %v103_v19  ;;  %v95_v35 = vld [vmem:[%s414_s2] sm:$0xff]  ;;  %p265_p4 = pnand %p264_p3, %p258_p0 }
  0x12   :  { %236 = vmatprep.subr.mxu1 %v118_v20  ;;  %v219_v41 = vld [vmem:[%s414_s2 + $0x100] ss:$0 sm:$0xff] }
  0x13   :  { %237 = vmatpush3.msra.mxu1 %v102_v21 }
  0x14   :  { %238 = vmatprep.subr.mxu1 %v117_v22 }
  0x15   :  { %239 = vmatpush3.msra.mxu1 %v101_v23 }
  0x16   :  { %240 = vmatprep.subr.mxu1 %v116_v24 }
  0x17   :  { %241 = vmatpush3.msra.mxu1 %v100_v25 }
  0x18   :  { %242 = vmatprep.subr.mxu1 %v115_v26 }
  0x19   :  { %243 = vmatpush3.msra.mxu1 %v99_v27 }
  0x1a   :  { %244 = vmatprep.subr.mxu1 %v114_v28 }
  0x1b   :  { %245 = vmatpush3.msra.mxu1 %v98_v29 }
  0x1c   :  { %246 = vmatprep.subr.mxu1 %v113_v30 }
  0x1d   :  { %247 = vmatpush3.msra.mxu1 %v97_v31 }
  0x1e   :  { %248 = vmatprep.subr.mxu1 %v112_v32 }
  0x1f   :  { %249 = vmatpush3.msra.mxu1 %v96_v33 }
  0x20   :  { %250 = vmatprep.subr.mxu1 %v111_v34 }
  0x21   :  { %251 = vmatpush3.msra.mxu1 %v95_v35 }
  0xc4   :  { %v88_v36 = vpop.f32.mrf.mxu0 }
  0xc5   :  { %v93_v39 = vmax.f32 %v88_v36, 0.0 }
  0xc6   :  { %v90_v37 = vpop.f32.mrf.mxu0 }
  0xc7   :  { %v94_v38 = vmax.f32 %v90_v37, 0.0 }
  0xc9   :  { %196 = vmatprep.mubr.f32.mxu1 %v94_v38 }
  0xca   :  { %197 = vmatmul.mubr.f32.vlgmr.msra.gmra.mxu1 %v93_v39 }
 0x18a   :  { %v252_v40 = vpop.f32.mrf.mxu1 }
 0x18c   :  { %v253_v42 = vpop.f32.mrf.mxu1 }
 0x18d   :  { %v254_v43 = vadd.f32 %v253_v42, %v252_v40 }
 0x18f   :  { %v199_v44 = vadd.f32 %v254_v43, %v219_v41 }
 0x191   :  { %203 = vst.msk [vmem:[#allocation2] sm:$0xff] %vm202_vm1, %v199_v44 }
 0x192   :  { %268 = shalt.err (!%p265_p4)
}
 0x193   :  { %213 = dma.vmem_to_hbm [thread:$0]  %s211_s25, 128, %s415_s3, [#allocation3]  }
 0x194   :  { %277 = dma.done.wait [#allocation3], 128  }
 0x195   :  { %278 = vsyncadd [#allocation3], 4294967168 }
 0x196   :  { %217 = vsyncpa [#allocation3], 1 }

</bundles_post_ra>
